<compile_context>
chip_gen: v7x
topology: tpu7x:2x2x1
jax: 0.10.0
libtpu: 0.0.40
codegen_flags: <defaults>
</compile_context>

<pallas_src>
import functools

import jax
import jax.numpy as jnp
from jax.experimental import pallas as pl
from jax.experimental.pallas import tpu as pltpu


# ---------------------------------------------------------------------------
# Kernel
# ---------------------------------------------------------------------------
def _mfg_ff_kernel(x_ref, wm_ref, ws_ref, eps_ref, o_ref,
                   eps_acc_ref, sp_ref, o_acc_ref, *, n_latent):
    """One (out_tile j, k_tile kk, latent_step l) grid point.

    x_ref:       (batch, k_tile)                  resident per K tile
    wm_ref/ws_ref: (k_tile, out_tile)             resident per (K, out) tile
    eps_ref:     (latent_block, k_tile, out_tile) streamed per latent step
    o_ref:       (batch, out_tile)                written once at the very end
    eps_acc_ref: (k_tile, out_tile) f32           latent-noise sum accumulator
    sp_ref:      (k_tile, out_tile) f32           hoisted softplus(weights_s)
    o_acc_ref:   (batch, out_tile) f32            matmul accumulator over K tiles
    """
    kk = pl.program_id(1)
    l = pl.program_id(2)
    last_kk = pl.num_programs(1) - 1
    last_l = pl.num_programs(2) - 1

    @pl.when(l == 0)
    def _():
        eps_acc_ref[...] = jnp.zeros_like(eps_acc_ref)
        # Hoist the EUP transcendental pass off the per-tile tail: compute it once per
        # (K, out) tile on the first latent step, hidden under eps streaming.
        sp_ref[...] = jax.nn.softplus(ws_ref[...].astype(jnp.float32))

    @pl.when(jnp.logical_and(kk == 0, l == 0))
    def _():
        o_acc_ref[...] = jnp.zeros_like(o_acc_ref)

    # Pure VPU adds: accumulate the sum of the latent noise draws for this tile.
    # (Upcast first so elementwise math stays f32 even if eps is streamed narrower.)
    eps_acc_ref[...] += jnp.sum(eps_ref[...].astype(jnp.float32), axis=0)

    @pl.when(l == last_l)
    def _():
        # One matmul per (K, out) tile, using the folded mean of the latent noise.
        eps_mean = eps_acc_ref[...] * (1.0 / n_latent)
        w = eps_mean * sp_ref[...] + wm_ref[...].astype(jnp.float32)
        o_acc_ref[...] += jnp.dot(
            x_ref[...].astype(jnp.float32), w, preferred_element_type=jnp.float32
        )

    @pl.when(jnp.logical_and(l == last_l, kk == last_kk))
    def _():
        o_ref[...] = o_acc_ref[...].astype(o_ref.dtype)


# ---------------------------------------------------------------------------
# Tile selection helpers
# ---------------------------------------------------------------------------
def _out_tile_candidates(out_features):
    # Lane-dense tiles (multiple of 128), largest first for contiguous eps runs,
    # but prefer choices that yield >= 2 out tiles so both v7x TensorCores are fed.
    cands = [t for t in (1024, 512, 256, 128) if out_features % t == 0]
    if not cands:
        # TODO(synk): pad out_features to a multiple of 128 instead of masked stores.
        return [out_features]
    multi = [t for t in cands if out_features // t >= 2]
    return multi if multi else cands


def _k_tile_candidates(in_features):
    # Full K first (fully contiguous eps slab per out tile), then 128-multiples
    # (x's last-dim block must be a multiple of 128 once K is tiled).
    cands = [in_features]
    t = 1024
    while t >= 128:
        if t < in_features and in_features % t == 0:
            cands.append(t)
        t //= 2
    return cands


def _vmem_estimate(batch, k_tile, out_tile, latent_block, eps_itemsize):
    eps_buf = 2 * latent_block * k_tile * out_tile * eps_itemsize   # double-buffered eps
    w_buf = 2 * 2 * k_tile * out_tile * 4                           # wm, ws (double-buffered)
    x_buf = 2 * batch * k_tile * 4
    o_buf = 2 * batch * out_tile * 4
    scratch = 2 * k_tile * out_tile * 4 + batch * out_tile * 4      # eps_acc + sp + o_acc
    return eps_buf + w_buf + x_buf + o_buf + scratch


def _choose_tiling(batch, in_features, out_features, n_latent, eps_itemsize,
                   vmem_budget, target_eps_bytes, out_tile, k_tile, latent_block):
    out_cands = [out_tile] if out_tile is not None else _out_tile_candidates(out_features)
    k_cands = [k_tile] if k_tile is not None else _k_tile_candidates(in_features)

    fallback = None
    for ot in out_cands:
        for kt in k_cands:
            if latent_block is not None:
                lb = max(1, min(latent_block, n_latent))
            else:
                lb = max(1, target_eps_bytes // max(1, kt * ot * eps_itemsize))
                lb = min(lb, n_latent)
            while lb > 1 and _vmem_estimate(batch, kt, ot, lb, eps_itemsize) > vmem_budget:
                lb = max(1, lb // 2)
            fallback = (ot, kt, lb)
            if _vmem_estimate(batch, kt, ot, lb, eps_itemsize) <= vmem_budget:
                return ot, kt, lb
    return fallback


def _resolve_latent_block(n_latent, lb_target):
    """Return (latent_block, padded_n_latent)."""
    lb_target = max(1, min(lb_target, n_latent))
    if n_latent % lb_target == 0:
        return lb_target, n_latent
    # Largest divisor of n_latent not exceeding the target.
    d = lb_target
    while n_latent % d != 0:
        d -= 1
    if 2 * d >= lb_target:
        return d, n_latent
    # Otherwise zero-pad the latent axis so blocks stay large instead of collapsing
    # toward 1 draw/step (exact: zero draws don't change the sum; we divide by the
    # true n_latent).
    padded = pl.cdiv(n_latent, lb_target) * lb_target
    return lb_target, padded


# ---------------------------------------------------------------------------
# Public wrapper
# ---------------------------------------------------------------------------
def mean_field_gaussian_feedforward(
    x, weights_m, weights_s, eps, *,
    out_tile=None, k_tile=None, latent_block=None,
    vmem_budget_bytes=36 << 20,          # tile-selection budget (safe on v7x's 64 MiB)
    target_eps_block_bytes=4 << 20,      # ~2-4 MiB eps DMA blocks -> ~90-95% HBM roofline
):
    """Pallas implementation of MeanFieldGaussianFeedForward.forward (retrieve_latent=False).

    x:         (batch, in_features)
    weights_m: (in_features, out_features)
    weights_s: (in_features, out_features)
    eps:       (n_latent, in_features, out_features)  standard-normal draws
    returns:   (batch, out_features) float32
    """
    batch, in_features = x.shape
    n_latent, in_f2, out_features = eps.shape
    assert in_f2 == in_features
    assert weights_m.shape == (in_features, out_features)
    assert weights_s.shape == (in_features, out_features)

    eps_itemsize = jnp.dtype(eps.dtype).itemsize
    out_tile, k_tile, lb_target = _choose_tiling(
        batch, in_features, out_features, n_latent, eps_itemsize,
        vmem_budget_bytes, target_eps_block_bytes, out_tile, k_tile, latent_block)

    assert out_features % out_tile == 0
    assert in_features % k_tile == 0
    assert k_tile == in_features or k_tile % 128 == 0, (
        "k_tile must be a multiple of 128 when K is tiled (x last-dim block constraint)")

    latent_block, padded_n = _resolve_latent_block(n_latent, lb_target)
    if padded_n != n_latent:
        eps = jnp.pad(eps, ((0, padded_n - n_latent), (0, 0), (0, 0)))

    n_out_tiles = out_features // out_tile
    n_k_tiles = in_features // k_tile
    n_latent_steps = padded_n // latent_block

    kernel = functools.partial(_mfg_ff_kernel, n_latent=n_latent)

    # Explicit VMEM budget so large double-buffered eps blocks compile on all gens
    # (scoped default is only 16/32 MiB on v5e/v6e; v7x physical is 64 MiB).
    vmem_est = _vmem_estimate(batch, k_tile, out_tile, latent_block, eps_itemsize)
    vmem_limit = int(min(48 << 20, max(32 << 20, vmem_est * 5 // 4 + (2 << 20))))

    cost = pl.CostEstimate(
        flops=int(2 * batch * in_features * out_features            # the folded matmul
                  + n_latent * in_features * out_features           # eps accumulation adds
                  + 2 * in_features * out_features),                # w construction
        transcendentals=int(2 * in_features * out_features),        # softplus
        bytes_accessed=int(n_latent * in_features * out_features * eps_itemsize
                           + 2 * in_features * out_features * 4
                           + batch * in_features * 4
                           + batch * out_features * 4),
    )

    return pl.pallas_call(
        kernel,
        out_shape=jax.ShapeDtypeStruct((batch, out_features), jnp.float32),
        grid_spec=pltpu.PrefetchScalarGridSpec(
            num_scalar_prefetch=0,
            # out-feature tiles first (parallel -> megacore), K and latent reductions last.
            grid=(n_out_tiles, n_k_tiles, n_latent_steps),
            in_specs=[
                pl.BlockSpec((batch, k_tile), lambda j, kk, l: (0, kk)),       # x
                pl.BlockSpec((k_tile, out_tile), lambda j, kk, l: (kk, j)),    # weights_m
                pl.BlockSpec((k_tile, out_tile), lambda j, kk, l: (kk, j)),    # weights_s
                pl.BlockSpec((latent_block, k_tile, out_tile),
                             lambda j, kk, l: (l, kk, j)),                     # eps (streamed)
            ],
            out_specs=pl.BlockSpec((batch, out_tile), lambda j, kk, l: (0, j)),
            scratch_shapes=[
                pltpu.VMEM((k_tile, out_tile), jnp.float32),   # eps sum accumulator
                pltpu.VMEM((k_tile, out_tile), jnp.float32),   # hoisted softplus(ws)
                pltpu.VMEM((batch, out_tile), jnp.float32),    # output accumulator over K
            ],
        ),
        compiler_params=pltpu.CompilerParams(
            dimension_semantics=("parallel", "arbitrary", "arbitrary"),
            vmem_limit_bytes=vmem_limit,
        ),
        cost_estimate=cost,
    )(x, weights_m, weights_s, eps)


# ---------------------------------------------------------------------------
# Self-test
# ---------------------------------------------------------------------------
def _reference(x, weights_m, weights_s, eps):
    sampled_w = eps * jax.nn.softplus(weights_s) + weights_m
    return jnp.einsum("ij,kjl->kil", x, sampled_w).mean(0)


if __name__ == "__main__":
    key = jax.random.PRNGKey(0)

    # --- Test 1: small layer, default tiling (auto out_tile / latent_block). ---
    batch, in_features, out_features, n_latent = 8, 16, 256, 8
    k_x, k_wm, k_ws, k_eps = jax.random.split(key, 4)
    x = jax.random.normal(k_x, (batch, in_features), dtype=jnp.float32)
    weights_m = jax.random.normal(k_wm, (in_features, out_features), dtype=jnp.float32)
    weights_s = jax.random.normal(k_ws, (in_features, out_features), dtype=jnp.float32)
    eps = jax.random.normal(k_eps, (n_latent, in_features, out_features), dtype=jnp.float32)

    ref = _reference(x, weights_m, weights_s, eps)

    out = jax.block_until_ready(mean_field_gaussian_feedforward(x, weights_m, weights_s, eps))
    assert out.shape == (batch, out_features)
    assert jnp.allclose(out, ref, atol=1e-3, rtol=1e-3), float(jnp.max(jnp.abs(out - ref)))

    # --- Test 2: explicit multi-step latent reduction (exercises eps accumulator). ---
    out2 = jax.block_until_ready(mean_field_gaussian_feedforward(
        x, weights_m, weights_s, eps, out_tile=128, latent_block=2))
    assert jnp.allclose(out2, ref, atol=1e-3, rtol=1e-3), float(jnp.max(jnp.abs(out2 - ref)))

    # --- Test 3: non-divisible latent_block (exercises zero-padded latent tail). ---
    out3 = jax.block_until_ready(mean_field_gaussian_feedforward(
        x, weights_m, weights_s, eps, out_tile=128, latent_block=3))
    assert jnp.allclose(out3, ref, atol=1e-3, rtol=1e-3), float(jnp.max(jnp.abs(out3 - ref)))

    # --- Test 4: K (in_features) tiling path with two K tiles. ---
    b2, inf2, outf2, nl2 = 8, 256, 256, 4
    k_x, k_wm, k_ws, k_eps = jax.random.split(jax.random.PRNGKey(1), 4)
    x2 = jax.random.normal(k_x, (b2, inf2), dtype=jnp.float32)
    wm2 = jax.random.normal(k_wm, (inf2, outf2), dtype=jnp.float32)
    ws2 = jax.random.normal(k_ws, (inf2, outf2), dtype=jnp.float32)
    eps2 = jax.random.normal(k_eps, (nl2, inf2, outf2), dtype=jnp.float32)
    ref2 = _reference(x2, wm2, ws2, eps2)
    out4 = jax.block_until_ready(mean_field_gaussian_feedforward(
        x2, wm2, ws2, eps2, out_tile=128, k_tile=128))
    assert jnp.allclose(out4, ref2, atol=1e-3, rtol=1e-3), float(jnp.max(jnp.abs(out4 - ref2)))

    print("KERNEL_OK")
</pallas_src>

<mosaic_0001>
module attributes {stable_mosaic.version = 11 : i64} {
  func.func @_mfg_ff_kernel(%arg0: i32, %arg1: i32, %arg2: i32, %arg3: memref<8x16xf32, #tpu.memory_space<vmem>>, %arg4: memref<16x128xf32, #tpu.memory_space<vmem>>, %arg5: memref<16x128xf32, #tpu.memory_space<vmem>>, %arg6: memref<8x16x128xf32, #tpu.memory_space<vmem>>, %arg7: memref<8x128xf32, #tpu.memory_space<vmem>>, %arg8: memref<16x128xf32, #tpu.memory_space<vmem>>, %arg9: memref<16x128xf32, #tpu.memory_space<vmem>>, %arg10: memref<8x128xf32, #tpu.memory_space<vmem>>) attributes {dimension_semantics = [#tpu.dimension_semantics<parallel>, #tpu.dimension_semantics<arbitrary>, #tpu.dimension_semantics<arbitrary>], iteration_bounds = array<i64: 2, 1, 1>, scalar_prefetch = 0 : i64, scratch_operands = 3 : i64, tpu.core_type = #tpu.core_type<tc>, window_params = [{transform_indices = @transform_0, window_bounds = array<i64: 8, 16>}, {transform_indices = @transform_1, window_bounds = array<i64: 16, 128>}, {transform_indices = @transform_2, window_bounds = array<i64: 16, 128>}, {transform_indices = @transform_3, window_bounds = array<i64: 8, 16, 128>}, {transform_indices = @transform_4, window_bounds = array<i64: 8, 128>}]} {
    %c0_i32 = arith.constant 0 : i32
    %0 = arith.cmpi eq, %arg2, %c0_i32 : i32
    %1 = arith.extui %0 : i1 to i32
    %c0_i32_0 = arith.constant 0 : i32
    %2 = arith.cmpi ne, %1, %c0_i32_0 : i32
    scf.if %2 {
      %cst_15 = arith.constant 0.000000e+00 : f32
      %21 = vector.broadcast %cst_15 : f32 to vector<16x128xf32>
      %c0_16 = arith.constant 0 : index
      %c0_17 = arith.constant 0 : index
      %22 = vector.load %arg8[%c0_16, %c0_17] : memref<16x128xf32, #tpu.memory_space<vmem>>, vector<16x128xf32>
      tpu.vector_store %arg8[%c0_16, %c0_17], %21 {strides = array<i32>} : memref<16x128xf32, #tpu.memory_space<vmem>>, vector<16x128xf32>,
      %c0_18 = arith.constant 0 : index
      %c0_19 = arith.constant 0 : index
      %23 = vector.load %arg5[%c0_18, %c0_19] : memref<16x128xf32, #tpu.memory_space<vmem>>, vector<16x128xf32>
      %cst_20 = arith.constant 0.000000e+00 : f32
      %24 = vector.broadcast %cst_20 : f32 to vector<16x128xf32>
      %25 = arith.maximumf %23, %24 : vector<16x128xf32>
      %26 = vector.broadcast %cst_20 : f32 to vector<16x128xf32>
      %27 = arith.subf %23, %26 : vector<16x128xf32>
      %28 = arith.cmpf one, %27, %27 : vector<16x128xf32>
      %29 = vector.broadcast %cst_20 : f32 to vector<16x128xf32>
      %30 = arith.addf %23, %29 : vector<16x128xf32>
      %31 = math.absf %27 : vector<16x128xf32>
      %cst_21 = arith.constant 0.000000e+00 : f32
      %32 = vector.broadcast %cst_21 : f32 to vector<16x128xf32>
      %33 = arith.subf %32, %31 : vector<16x128xf32>
      %34 = math.exp %33 : vector<16x128xf32>
      %35 = math.log1p %34 : vector<16x128xf32>
      %36 = arith.addf %25, %35 : vector<16x128xf32>
      %37 = arith.select %28, %30, %36 : vector<16x128xi1>, vector<16x128xf32>
      %c0_22 = arith.constant 0 : index
      %c0_23 = arith.constant 0 : index
      %38 = vector.load %arg9[%c0_22, %c0_23] : memref<16x128xf32, #tpu.memory_space<vmem>>, vector<16x128xf32>
      tpu.vector_store %arg9[%c0_22, %c0_23], %37 {strides = array<i32>} : memref<16x128xf32, #tpu.memory_space<vmem>>, vector<16x128xf32>,
    } else {
    }
    %c0_i32_1 = arith.constant 0 : i32
    %3 = arith.cmpi eq, %arg1, %c0_i32_1 : i32
    %c0_i32_2 = arith.constant 0 : i32
    %4 = arith.cmpi eq, %arg2, %c0_i32_2 : i32
    %5 = arith.andi %3, %4 : i1
    %6 = arith.extui %5 : i1 to i32
    %c0_i32_3 = arith.constant 0 : i32
    %7 = arith.cmpi ne, %6, %c0_i32_3 : i32
    scf.if %7 {
      %cst_15 = arith.constant 0.000000e+00 : f32
      %21 = vector.broadcast %cst_15 : f32 to vector<8x128xf32>
      %c0_16 = arith.constant 0 : index
      %c0_17 = arith.constant 0 : index
      %22 = vector.load %arg10[%c0_16, %c0_17] : memref<8x128xf32, #tpu.memory_space<vmem>>, vector<8x128xf32>
      tpu.vector_store %arg10[%c0_16, %c0_17], %21 {strides = array<i32>} : memref<8x128xf32, #tpu.memory_space<vmem>>, vector<8x128xf32>,
    } else {
    }
    %c0 = arith.constant 0 : index
    %c0_4 = arith.constant 0 : index
    %8 = vector.load %arg8[%c0, %c0_4] : memref<16x128xf32, #tpu.memory_space<vmem>>, vector<16x128xf32>
    %c0_5 = arith.constant 0 : index
    %c0_6 = arith.constant 0 : index
    %c0_7 = arith.constant 0 : index
    %9 = vector.load %arg6[%c0_5, %c0_6, %c0_7] : memref<8x16x128xf32, #tpu.memory_space<vmem>>, vector<8x16x128xf32>
    %cst = arith.constant dense<0.000000e+00> : vector<16x128xf32>
    %10 = vector.multi_reduction <add>, %9, %cst [0] : vector<8x16x128xf32> to vector<16x128xf32>
    %11 = arith.addf %8, %10 : vector<16x128xf32>
    %c0_8 = arith.constant 0 : index
    %c0_9 = arith.constant 0 : index
    %12 = vector.load %arg8[%c0_8, %c0_9] : memref<16x128xf32, #tpu.memory_space<vmem>>, vector<16x128xf32>
    tpu.vector_store %arg8[%c0_8, %c0_9], %11 {strides = array<i32>} : memref<16x128xf32, #tpu.memory_space<vmem>>, vector<16x128xf32>,
    %c0_i32_10 = arith.constant 0 : i32
    %13 = arith.cmpi eq, %arg2, %c0_i32_10 : i32
    %14 = arith.extui %13 : i1 to i32
    %c0_i32_11 = arith.constant 0 : i32
    %15 = arith.cmpi ne, %14, %c0_i32_11 : i32
    scf.if %15 {
      %c0_15 = arith.constant 0 : index
      %c0_16 = arith.constant 0 : index
      %21 = vector.load %arg8[%c0_15, %c0_16] : memref<16x128xf32, #tpu.memory_space<vmem>>, vector<16x128xf32>
      %cst_17 = arith.constant 1.250000e-01 : f32
      %22 = vector.broadcast %cst_17 : f32 to vector<16x128xf32>
      %23 = arith.mulf %21, %22 : vector<16x128xf32>
      %c0_18 = arith.constant 0 : index
      %c0_19 = arith.constant 0 : index
      %24 = vector.load %arg9[%c0_18, %c0_19] : memref<16x128xf32, #tpu.memory_space<vmem>>, vector<16x128xf32>
      %25 = arith.mulf %23, %24 : vector<16x128xf32>
      %c0_20 = arith.constant 0 : index
      %c0_21 = arith.constant 0 : index
      %26 = vector.load %arg4[%c0_20, %c0_21] : memref<16x128xf32, #tpu.memory_space<vmem>>, vector<16x128xf32>
      %27 = arith.addf %25, %26 : vector<16x128xf32>
      %c0_22 = arith.constant 0 : index
      %c0_23 = arith.constant 0 : index
      %28 = vector.load %arg10[%c0_22, %c0_23] : memref<8x128xf32, #tpu.memory_space<vmem>>, vector<8x128xf32>
      %c0_24 = arith.constant 0 : index
      %c0_25 = arith.constant 0 : index
      %29 = vector.load %arg3[%c0_24, %c0_25] : memref<8x16xf32, #tpu.memory_space<vmem>>, vector<8x16xf32>
      %cst_26 = arith.constant dense<0.000000e+00> : vector<8x128xf32>
      %30 = tpu.matmul %29, %27, %cst_26 {dimension_numbers = #tpu.dot_dimension_numbers<[1], [0], [0], [1], [0, 0, 1, 1], [], []>} : vector<8x16xf32>, vector<16x128xf32>, vector<8x128xf32> -> vector<8x128xf32>
      %31 = arith.addf %28, %30 : vector<8x128xf32>
      %c0_27 = arith.constant 0 : index
      %c0_28 = arith.constant 0 : index
      %32 = vector.load %arg10[%c0_27, %c0_28] : memref<8x128xf32, #tpu.memory_space<vmem>>, vector<8x128xf32>
      tpu.vector_store %arg10[%c0_27, %c0_28], %31 {strides = array<i32>} : memref<8x128xf32, #tpu.memory_space<vmem>>, vector<8x128xf32>,
    } else {
    }
    %c0_i32_12 = arith.constant 0 : i32
    %16 = arith.cmpi eq, %arg2, %c0_i32_12 : i32
    %c0_i32_13 = arith.constant 0 : i32
    %17 = arith.cmpi eq, %arg1, %c0_i32_13 : i32
    %18 = arith.andi %16, %17 : i1
    %19 = arith.extui %18 : i1 to i32
    %c0_i32_14 = arith.constant 0 : i32
    %20 = arith.cmpi ne, %19, %c0_i32_14 : i32
    scf.if %20 {
      %c0_15 = arith.constant 0 : index
      %c0_16 = arith.constant 0 : index
      %21 = vector.load %arg10[%c0_15, %c0_16] : memref<8x128xf32, #tpu.memory_space<vmem>>, vector<8x128xf32>
      %c0_17 = arith.constant 0 : index
      %c0_18 = arith.constant 0 : index
      %22 = vector.load %arg7[%c0_17, %c0_18] : memref<8x128xf32, #tpu.memory_space<vmem>>, vector<8x128xf32>
      tpu.vector_store %arg7[%c0_17, %c0_18], %21 {strides = array<i32>} : memref<8x128xf32, #tpu.memory_space<vmem>>, vector<8x128xf32>,
    } else {
    }
    return
  }
  func.func @transform_0(%arg0: i32, %arg1: i32, %arg2: i32) -> (i32, i32) {
    %c0_i32 = arith.constant 0 : i32
    %c0_i32_0 = arith.constant 0 : i32
    return %c0_i32, %arg1 : i32, i32
  }
  func.func @transform_1(%arg0: i32, %arg1: i32, %arg2: i32) -> (i32, i32) {
    %c0_i32 = arith.constant 0 : i32
    return %arg1, %arg0 : i32, i32
  }
  func.func @transform_2(%arg0: i32, %arg1: i32, %arg2: i32) -> (i32, i32) {
    %c0_i32 = arith.constant 0 : i32
    return %arg1, %arg0 : i32, i32
  }
  func.func @transform_3(%arg0: i32, %arg1: i32, %arg2: i32) -> (i32, i32, i32) {
    %c0_i32 = arith.constant 0 : i32
    return %arg2, %arg1, %arg0 : i32, i32, i32
  }
  func.func @transform_4(%arg0: i32, %arg1: i32, %arg2: i32) -> (i32, i32) {
    %c0_i32 = arith.constant 0 : i32
    %c0_i32_0 = arith.constant 0 : i32
    return %c0_i32, %arg0 : i32, i32
  }
}

</mosaic_0001>

<bundles_post_ra>
// kernel: tpu_custom_call.1
= control target key start
LH: loop header
LB: loop body
LE: loop exit
PB: predicated region body
PF: predicated region fallthrough
CT: control target
= control target key end

     0   :  { %s1425_s0 = inlined_call_operand.hbm [shape: f32[8,16], index: 0, kind: input, shape index: {}]   ;;  %s1426_s1 = inlined_call_operand.hbm [shape: f32[16,256], index: 1, kind: input, shape index: {}]   ;;  %s1427_s2 = inlined_call_operand.hbm [shape: f32[16,256], index: 2, kind: input, shape index: {}]   ;;  %s1428_s3 = inlined_call_operand.hbm [shape: f32[8,16,256], index: 3, kind: input, shape index: {}]   ;;  %s1429_s4 = inlined_call_operand.hbm [shape: f32[8,256], index: 4, kind: output, shape index: {}]  }
   0x1   :  { %1452 = sst [smem:[#allocation25_spill]] %s1426_s1 }
   0x2   :  { %1453 = sst [smem:[#allocation26_spill]] %s1427_s2 }
   0x3   :  { %9 = vsyncpa [#allocation6], 0 }
   0x4   :  { %10 = vsyncpa [#allocation9], 0 }
   0x5   :  { %12 = vsyncpa [#allocation9 + $0x1], 0 }
   0x6   :  { %13 = vsyncpa [#allocation12], 0 }
   0x7   :  { %15 = vsyncpa [#allocation12 + $0x1], 0 }
   0x8   :  { %16 = vsyncpa [#allocation7], 0 }
   0x9   :  { %18 = vsyncpa [#allocation7 + $0x1], 0  ;;  %s1076_s15 = smov 0   ;;  %s1078_s16 = smov 0  }
   0xa   :  { %s1080_s17 = smov 0   ;;  %s1082_s18 = smov 0  }
   0xb   :  { %s1084_s19 = smov 0   ;;  %s1086_s20 = smov 0  }
   0xc LB: > { %1454 = sst [smem:[#allocation18_spill]] %s1018_s15  ;;  %s43_s21 = sadd.s32 1, %s1034_s19  ;;  %s1038_s20 = sphi %s1086_s20, %s24_s20   ;;  %s1034_s19 = sphi %s1084_s19, %s1492_s19   ;;  %s1030_s18 = sphi %s1082_s18, %s1491_s18   ;;  %s1026_s17 = sphi %s1080_s17, %s1490_s17   ;;  %s1022_s16 = sphi %s1078_s16, %s1494_s16   ;;  %s1018_s15 = sphi %s1076_s15, %s1493_s15  }
   0xd   : > { %1455 = sst [smem:[#allocation19_spill]] %s1026_s17  ;;  %s78_s22 = sadd.s32 1, %s1026_s17 }
   0xe   : > { %1456 = sst [smem:[#allocation20_spill]] %s1034_s19  ;;  %p45_p0 = scmp.ge.s32.totalorder %s43_s21, 2 }
   0xf   : > { %1457 = sst [smem:[#allocation21_spill]] %s1038_s20  ;;  %p1430_p1 = scmp.ne.s32.totalorder %s1026_s17, %s1022_s16 }
  0x10   : > { %p86_p2 = scmp.eq.s32.totalorder %s1038_s20, 0  ;;  %s1496_s21 = smov (%p45_p0, %s43_s21), 0 }
  0x11   : > { %1458 = sst [smem:[#allocation22_spill]] %s1496_s21  ;;  %p764_p5 = scmp.lt.s32.totalorder %s1038_s20, 2 }
  0x12   : > { %p87_p4 = por %p86_p2, %p1430_p1  ;;  %s74_s23 = ssub.s32 %s1034_s19, %s1496_s21 }
  0x13   : > { %s212_s24 = sand.u32 1, %s1038_s20   ;;  %p76_p6 = scmp.eq.s32.totalorder %s74_s23, 0 }
  0x14   : > { %s1122_s25 = sand.u32 1, %s1026_s17   ;;  %s1125_s26 = sshll.u32 %s1034_s19, 7 }
  0x15   : > { %s1128_s27 = scalar_select %p76_p6, %s1026_s17, %s78_s22  }
  0x16   : > { %s703_s28 = sshll.u32 %s1122_s25, 4  ;;  %s1460_s1 = sld [smem:[#allocation25_spill]] }
  0x17   : > { %1459 = sst [smem:[#allocation23_spill]] %s1128_s27  ;;  %p1137_p7 = pnand %p764_p5, %p87_p4 }
  0x18   : > { %s216_s7 = scalar_lea.vmem [#allocation8], %s703_s28  ;;  %s1145_s9 = scalar_lea.sflag [#allocation9], %s212_s24 }
  0x19   : > { %s1461_s6 = scalar_select %p1137_p7, 1, 0 }
  0x1a   : > { %s225_s8 = sshll.u32 %s216_s7, 4  ;;  %p1151_p9 = pneg %p1137_p7  ;;  %s1143_s8 = int_to_ptr.vmem [resolvable:$true] %s225_s8 }
  0x1c   : > { %s1135_s5 = scalar_lea.hbm %s1460_s1, %s1125_s26  ;;  %s835_s14 = scalar_lea.hbm %s1460_s1, 512 }
  0x1d   : > { %s830_s10 = scalar_lea.hbm %s1135_s5, 256  ;;  %p836_p12 = scmp.lt.u32.totalorder %s1135_s5, %s1460_s1 }
  0x1e   : > { %p831_p8 = scmp.ne.s32.totalorder %s1135_s5, %s830_s10  ;;  %p837_p13 = scmp.lt.u32.totalorder %s835_s14, %s830_s10 }
  0x1f   : > { %s1462_s11 = scalar_select %p1151_p9, 1, 0 }
  0x20   : > { %p833_p10 = pnand %p1151_p9, %p831_p8  ;;  %p838_p0 = por %p837_p13, %p836_p12 }
  0x21   : > { %p839_p2 = scmp.lt.u32.totalorder %s830_s10, %s1135_s5 }
  0x22   : > { %p834_p11 = pneg %p833_p10 }
  0x23   : > { %p840_p4 = por %p839_p2, %p838_p0 }
  0x25   : > { %p841_p5 = pnand %p840_p4, %p834_p11 }
  0x27   : > { %844 = shalt.err (!%p841_p5)
}
  0x28   : > { %s845_s24 = scalar_lea.vmem %s1143_s8, 256  ;;  %s1040_s29 = smov [#allocation8]  }
  0x29   : > { %p846_p6 = scmp.ne.s32.totalorder %s1143_s8, %s845_s24  ;;  %s850_s30 = sshll.u32 %s1040_s29, 4  ;;  %s851_s30 = int_to_ptr.vmem [resolvable:$false] %s850_s30 }
  0x2a   : > { %s852_s7 = scalar_lea.vmem %s851_s30, 512  ;;  %p853_p3 = scmp.lt.s32.totalorder %s1143_s8, %s851_s30 }
  0x2b   : > { %p848_p8 = pnand %p846_p6, %p1151_p9  ;;  %p854_p1 = scmp.lt.s32.totalorder %s852_s7, %s845_s24 }
  0x2d   : > { %p849_p10 = pneg %p848_p8  ;;  %p855_p12 = por %p854_p1, %p853_p3 }
  0x2f   : > { %p856_p13 = pnand %p855_p12, %p849_p10 }
  0x31   : > { %859 = shalt.err (!%p856_p13)
}
  0x32   : > { %s1431_s10 = smov 256   ;;  %s1433_s12 = smov 128  }
  0x33   : > { %s1435_s13 = smov 8   ;;  %s239_s14 = scalar_lea.vmem [#allocation10], %s703_s28 }
  0x34   : > { %752 = dma.hbm_to_vmem [thread:$0]  (!%p1137_p7), %s1135_s5, 256, %s1143_s8, %s1145_s9, %s1431_s10, %s1433_s12, %s1435_s13  }
  0x35   : > { %s248_s22 = sshll.u32 %s239_s14, 4  ;;  %s1183_s23 = sadd.s32 4294967295, %s1038_s20   ;;  %s1180_s22 = int_to_ptr.vmem [resolvable:$true] %s248_s22 }
  0x36   : > { %s699_s24 = sadd.s32 4294967294, %s1038_s20   ;;  %p91_p1 = scmp.ne.s32.totalorder %s1022_s16, %s1018_s15 }
  0x37   : > { %p1439_p3 = scmp.eq.s32.totalorder %s1183_s23, 0  ;;  %p173_p11 = scmp.eq.s32.totalorder %s1183_s23, 1 }
  0x38   : > { %p179_p0 = scmp.eq.s32.totalorder %s699_s24, 1  ;;  %p700_p2 = scmp.ge.s32.totalorder %s1038_s20, 1 }
  0x39   : > { %p1193_p4 = por %p1439_p3, %p91_p1  ;;  %p1464_p5 = scmp.ne.s32.totalorder %s1026_s17, %s1022_s16 }
  0x3a   : > { %p1204_p8 = por %p179_p0, %p91_p1  ;;  %p186_p10 = scmp.lt.s32.totalorder %s1038_s20, 3 }
  0x3b   : > { %s1463_s5 = scalar_select %p1193_p4, 1, 0 }
  0x3c   : > { %p1200_p6 = por %p173_p11, %p1464_p5  ;;  %p1209_p12 = pnand %p700_p2, %p186_p10 }
  0x3d   : > { %s1466_s8 = scalar_select %p1204_p8, 1, 0 }
  0x3e   : > { %s1465_s28 = scalar_select %p1200_p6, 1, 0 }
  0x3f   : > { %1467 = sst [smem:[#allocation24_spill]] %s1466_s8  ;;  %s1044_s30 = smov [#allocation5]  }
  0x40   : > { %s1468_s29 = scalar_select %p1209_p12, 1, 0 }
  0x41   : > { %s201_s7 = sshll.u32 %s1044_s30, 4  ;;  %s1469_s2 = sld [smem:[#allocation26_spill]]  ;;  %s1213_s7 = int_to_ptr.vmem [resolvable:$true] %s201_s7 }
  0x47   : > { %s1219_s10 = scalar_lea.hbm %s1469_s2, %s1125_s26  ;;  %s865_s1 = scalar_lea.hbm %s1469_s2, 512 }
  0x48   : > { %s860_s12 = scalar_lea.hbm %s1219_s10, 256  ;;  %p866_p2 = scmp.lt.u32.totalorder %s1219_s10, %s1469_s2 }
  0x49   : > { %p861_p1 = scmp.ne.s32.totalorder %s1219_s10, %s860_s12  ;;  %p867_p5 = scmp.lt.u32.totalorder %s865_s1, %s860_s12 }
  0x4a   : > { %p869_p3 = scmp.lt.u32.totalorder %s860_s12, %s1219_s10 }
  0x4b   : > { %p863_p11 = pnand %p861_p1, %p1151_p9  ;;  %p868_p10 = por %p867_p5, %p866_p2 }
  0x4d   : > { %p864_p0 = pneg %p863_p11  ;;  %p870_p8 = por %p869_p3, %p868_p10 }
  0x4f   : > { %p871_p6 = pnand %p870_p8, %p864_p0 }
  0x51   : > { %874 = shalt.err (!%p871_p6)
}
  0x52   : > { %s875_s14 = scalar_lea.vmem %s1180_s22, 256  ;;  %s1045_s13 = smov [#allocation10]  }
  0x53   : > { %p876_p1 = scmp.ne.s32.totalorder %s1180_s22, %s875_s14  ;;  %s880_s24 = sshll.u32 %s1045_s13, 4  ;;  %s881_s24 = int_to_ptr.vmem [resolvable:$false] %s880_s24 }
  0x54   : > { %s882_s19 = scalar_lea.vmem %s881_s24, 512  ;;  %p883_p4 = scmp.lt.s32.totalorder %s1180_s22, %s881_s24 }
  0x55   : > { %p878_p11 = pnand %p876_p1, %p1151_p9  ;;  %p884_p12 = scmp.lt.s32.totalorder %s882_s19, %s875_s14 }
  0x57   : > { %p879_p13 = pneg %p878_p11  ;;  %p885_p2 = por %p884_p12, %p883_p4 }
  0x59   : > { %p886_p5 = pnand %p885_p2, %p879_p13 }
  0x5b   : > { %889 = shalt.err (!%p886_p5)
}
  0x5c   : > { %s1470_s1 = smov 8   ;;  %s1471_s21 = smov 128  }
  0x5d   : > { %s1472_s12 = smov 256   ;;  %p1473_p3 = scmp.eq.s32.totalorder %s1183_s23, 0 }
  0x5e   : > { %755 = dma.hbm_to_vmem [thread:$0]  (!%p1137_p7), %s1219_s10, 256, %s1180_s22, %s1145_s9, %s1472_s12, %s1471_s21, %s1470_s1  }
  0x5f   : > { %p1474_p6 = scmp.ne.s32.totalorder %s1468_s29, 0  ;;  %s707_s14 = sshll.u32 %s1122_s25, 7 }
  0x60   : > { %s1262_s19 = scalar_lea.hbm %s1428_s3, %s1125_s26  ;;  %s262_s2 = scalar_lea.vmem [#allocation11], %s707_s14 }
  0x61   : > { %p1475_p8 = pneg %p1474_p6  ;;  %s274_s27 = sshll.u32 %s262_s2, 4  ;;  %s1285_s27 = int_to_ptr.vmem [resolvable:$true] %s274_s27 }
  0x62   : > { %s890_s9 = scalar_lea.hbm %s1425_s0, 128 }
  0x63   : > { %p1253_p0 = pnand %p1475_p8, %p1473_p3  ;;  %p891_p4 = scmp.ne.s32.totalorder %s1425_s0, %s890_s9 }
  0x64   : > { %p897_p1 = scmp.lt.u32.totalorder %s890_s9, %s1425_s0 }
  0x65   : > { %p892_p12 = pneg %p1253_p0 }
  0x67   : > { %p893_p13 = pnand %p892_p12, %p891_p4 }
  0x69   : > { %p894_p10 = pneg %p893_p13 }
  0x6b   : > { %p899_p11 = pnand %p897_p1, %p894_p10 }
  0x6d   : > { %902 = shalt.err (!%p899_p11)
}
  0x6e   : > { %s903_s2 = scalar_lea.vmem %s1213_s7, 128  ;;  %p911_p8 = scmp.lt.s32.totalorder %s1213_s7, %s1213_s7 }
  0x6f   : > { %p904_p2 = scmp.ne.s32.totalorder %s1213_s7, %s903_s2  ;;  %p912_p6 = scmp.lt.s32.totalorder %s903_s2, %s903_s2 }
  0x71   : > { %p906_p5 = pnand %p904_p2, %p892_p12  ;;  %p913_p7 = por %p912_p6, %p911_p8 }
  0x73   : > { %p907_p3 = pneg %p906_p5 }
  0x75   : > { %p914_p9 = pnand %p913_p7, %p907_p3 }
  0x77   : > { %917 = shalt.err (!%p914_p9)
}
  0x78   : > { %748 = dma.hbm_to_vmem [thread:$0]  (!%p1253_p0), %s1425_s0, 128, %s1213_s7, [#allocation6]  }
  0x79   : > { %s259_s20 = scalar_lea.sflag [#allocation12], %s1122_s25  ;;  %s918_s26 = scalar_lea.hbm %s1262_s19, 2048 }
  0x7a   : > { %p919_p6 = scmp.ne.s32.totalorder %s1262_s19, %s918_s26  ;;  %p1477_p7 = scmp.ne.s32.totalorder %s1462_s11, 0 }
  0x7b   : > { %s923_s14 = scalar_lea.hbm %s1428_s3, 4096  ;;  %p924_p12 = scmp.lt.u32.totalorder %s1262_s19, %s1428_s3 }
  0x7c   : > { %p921_p9 = pnand %p919_p6, %p1477_p7  ;;  %p925_p13 = scmp.lt.u32.totalorder %s923_s14, %s918_s26 }
  0x7d   : > { %p927_p1 = scmp.lt.u32.totalorder %s918_s26, %s1262_s19 }
  0x7e   : > { %p922_p4 = pneg %p921_p9  ;;  %p926_p10 = por %p925_p13, %p924_p12 }
  0x80   : > { %p928_p0 = por %p927_p1, %p926_p10 }
  0x82   : > { %p929_p11 = pnand %p928_p0, %p922_p4 }
  0x84   : > { %932 = shalt.err (!%p929_p11)
}
  0x85   : > { %s933_s7 = scalar_lea.vmem %s1285_s27, 2048  ;;  %s1046_s9 = smov [#allocation11]  }
  0x86   : > { %p934_p2 = scmp.ne.s32.totalorder %s1285_s27, %s933_s7  ;;  %s938_s10 = sshll.u32 %s1046_s9, 4  ;;  %s939_s10 = int_to_ptr.vmem [resolvable:$false] %s938_s10 }
  0x87   : > { %s940_s22 = scalar_lea.vmem %s939_s10, 4096  ;;  %p941_p8 = scmp.lt.s32.totalorder %s1285_s27, %s939_s10 }
  0x88   : > { %p936_p5 = pnand %p934_p2, %p1477_p7  ;;  %p942_p6 = scmp.lt.s32.totalorder %s940_s22, %s933_s7 }
  0x8a   : > { %p937_p3 = pneg %p936_p5  ;;  %p943_p9 = por %p942_p6, %p941_p8 }
  0x8c   : > { %p944_p12 = pnand %p943_p9, %p937_p3 }
  0x8e   : > { %947 = shalt.err (!%p944_p12)
}
  0x8f   : > { %p1478_p4 = scmp.ne.s32.totalorder %s1461_s6, 0  ;;  %p1479_p7 = scmp.ne.s32.totalorder %s1468_s29, 0 }
  0x90   : > { %p1480_p13 = scmp.eq.s32.totalorder (!%p1479_p7), %s1183_s23, 0 }
  0x91   : > { %758 = dma.hbm_to_vmem [thread:$0]  (!%p1478_p4), %s1262_s19, 2048, %s1285_s27, %s259_s20, %s1472_s12, %s1471_s21, %s1470_s1  }
  0x92   : > { %286 = sbr.rel (%p1479_p7) target bundleno = 435 (0x1b3), region = 36 }
  0x99   : > { %1001 = dma.done.wait (%p1480_p13), [#allocation6], 128   ;;  %p1481_p10 = pmov %p1480_p13 }
  0x9a   : > { %s292_s6 = sand.u32 1, %s1183_s23   ;;  %s1322_s11 = sand.u32 1, %s1022_s16  }
  0x9b   : > { %1003 = vsyncadd (%p1481_p10), [#allocation6], 4294967168  ;;  %s711_s25 = sshll.u32 %s1322_s11, 4  ;;  %s293_s2 = scalar_lea.sflag [#allocation9], %s292_s6 }
  0x9c   : > { %s1325_s15 = scalar_lea.vmem [#allocation8], %s711_s25  ;;  %p1482_p1 = scmp.ne.s32.totalorder %s1463_s5, 0 }
  0x9e   : > { %1005 = dma.done.wait (%p1482_p1), %s293_s2, 512  }
  0x9f   : > { %1007 = vsyncadd (%p1482_p1), %s293_s2, 4294966784  ;;  %s713_s27 = sshll.u32 %s1322_s11, 7  ;;  %s305_s29 = scalar_lea.vmem [#allocation10], %s711_s25 }
  0xa0   : > { %s311_s1 = scalar_lea.sflag [#allocation12], %s1322_s11  ;;  %s1333_s21 = scalar_lea.vmem [#allocation11], %s713_s27 }
  0xa1   : > { %1009 = dma.done.wait (%p1482_p1), %s311_s1, 2048  }
  0xa2   : > { %1011 = vsyncadd (%p1482_p1), %s311_s1, 4294965248  ;;  %v1047_v0 = vmov 0.0|0.0   ;;  %vm1048_vm0 = vmmov 0   ;;  %v1049_v1 = vmov 0.0   ;;  %v1339_v2 = vld [vmem:[%s305_s29] sm:$0xff]  ;;  %v1341_v3 = vld [vmem:[%s305_s29 + $0x8] sm:$0xff] }
  0xa3   : > { %730 = vmatprep.subr.bf16.mxu0 %v1047_v0  ;;  %727 = vmatprep.mubr.msk.f32.mxu0 %vm1048_vm0, %v1049_v1  ;;  %v367_v4 = vand.u32 2147483647, %v1339_v2  ;;  %v368_v5 = vand.u32 2147483647, %v1341_v3  ;;  %v407_v6 = vld [vmem:[%s1333_s21] sm:$0xff]  ;;  %v409_v7 = vld [vmem:[%s1333_s21 + $0x10] sm:$0xff]  ;;  %vm363_vm3 = vcmp.ne.f32.partialorder %v1339_v2, %v1339_v2  ;;  %vm364_vm4 = vcmp.ne.f32.partialorder %v1341_v3, %v1341_v3 }
  0xa4   : > { %v408_v10 = vld [vmem:[%s1333_s21 + $0x8] sm:$0xff]  ;;  %v410_v11 = vld [vmem:[%s1333_s21 + $0x18] sm:$0xff]  ;;  %v423_v14 = vadd.f32 %v409_v7, %v407_v6  ;;  %v411_v15 = vld [vmem:[%s1333_s21 + $0x20] sm:$0xff]  ;;  %v361_v51 = vmax.f32 %v1339_v2, 0.0  ;;  %v362_v55 = vmax.f32 %v1341_v3, 0.0  ;;  %vm458_vm5 = vcmask 130048  }
  0xa5   : > { %v369_v8 = vsub.f32 0.0, %v367_v4  ;;  %v370_v9 = vsub.f32 0.0, %v368_v5  ;;  %v430_v16 = vadd.f32 %v410_v11, %v408_v10  ;;  %v412_v17 = vld [vmem:[%s1333_s21 + $0x28] sm:$0xff]  ;;  %v413_v19 = vld [vmem:[%s1333_s21 + $0x30] sm:$0xff]  ;;  %v414_v21 = vld [vmem:[%s1333_s21 + $0x38] sm:$0xff]  ;;  %s714_s23 = sshll.u32 %s1322_s11, 3 }
  0xa6   : > { %v424_v18 = vadd.f32 %v423_v14, %v411_v15  ;;  %v415_v23 = vld [vmem:[%s1333_s21 + $0x40] sm:$0xff]  ;;  %v416_v25 = vld [vmem:[%s1333_s21 + $0x48] sm:$0xff]  ;;  %v417_v30 = vld [vmem:[%s1333_s21 + $0x50] sm:$0xff]  ;;  %s348_s5 = scalar_lea.vmem [#allocation13], %s714_s23  ;;  %s717_s19 = sshll.u32 %s1030_s18, 7 }
  0xa7   : > { %v371_v12 = vmul.f32 1.442695, %v369_v8  ;;  %v373_v13 = vmul.f32 1.442695, %v370_v9  ;;  %v431_v20 = vadd.f32 %v430_v16, %v412_v17  ;;  %v418_v33 = vld [vmem:[%s1333_s21 + $0x58] sm:$0xff]  ;;  %v419_v37 = vld [vmem:[%s1333_s21 + $0x60] sm:$0xff]  ;;  %s1378_s26 = scalar_lea.hbm %s1429_s4, %s717_s19 }
  0xa8   : > { %v425_v22 = vadd.f32 %v424_v18, %v413_v19  ;;  %v420_v39 = vld [vmem:[%s1333_s21 + $0x68] sm:$0xff]  ;;  %v421_v44 = vld [vmem:[%s1333_s21 + $0x70] sm:$0xff]  ;;  %v422_v47 = vld [vmem:[%s1333_s21 + $0x78] sm:$0xff]  ;;  %s552_s12 = sshll.u32 %s348_s5, 4  ;;  %s539_s8 = scalar_lea.sflag [#allocation7], %s1322_s11  ;;  %s1373_s12 = int_to_ptr.vmem [resolvable:$true] %s552_s12 }
  0xa9   : > { %822 = vpow2.f32 %v371_v12  ;;  %v432_v24 = vadd.f32 %v431_v20, %v414_v21  ;;  %v452_v1 = vld [vmem:[%s1325_s15] sm:$0xff]  ;;  %v453_v6 = vld [vmem:[%s1325_s15 + $0x8] sm:$0xff]  ;;  %s948_s30 = scalar_lea.vmem %s1373_s12, 128  ;;  %p1483_p11 = scmp.ne.s32.totalorder %s1465_s28, 0 }
  0xaa   : > { %824 = vpow2.f32 %v373_v13  ;;  %v426_v27 = vadd.f32 %v425_v22, %v415_v23  ;;  %v457_v11 = vld [vmem:[#allocation5] sm:$0xff]  ;;  %p949_p0 = scmp.ne.s32.totalorder %s1373_s12, %s948_s30  ;;  %s1050_s18 = smov [#allocation13]  }
  0xab   : > { %v433_v31 = vadd.f32 %v432_v24, %v416_v25  ;;  %s952_s14 = sshll.u32 %s1050_s18, 4  ;;  %s953_s14 = int_to_ptr.vmem [resolvable:$false] %s952_s14 }
  0xac   : > { %v427_v35 = vadd.f32 %v426_v27, %v417_v30  ;;  %p950_p2 = pnand %p949_p0, %p1483_p11  ;;  %s954_s13 = scalar_lea.vmem %s953_s14, 256 }
  0xad   : > { %v434_v38 = vadd.f32 %v433_v31, %v418_v33  ;;  %p955_p3 = scmp.lt.s32.totalorder %s1373_s12, %s953_s14  ;;  %p956_p8 = scmp.lt.s32.totalorder %s954_s13, %s948_s30 }
  0xae   : > { %v428_v41 = vadd.f32 %v427_v35, %v419_v37  ;;  %p951_p5 = pneg %p950_p2 }
  0xaf   : > { %v435_v45 = vadd.f32 %v434_v38, %v420_v39  ;;  %p957_p6 = por %p956_p8, %p955_p3 }
  0xb0   : > { %v429_v49 = vadd.f32 %v428_v41, %v421_v44 }
  0xb1   : > { %v436_v53 = vadd.f32 %v435_v45, %v422_v47  ;;  %p958_p9 = pnand %p957_p6, %p951_p5 }
  0xb2   : > { %v446_v59 = vmul.f32 0.125, %v429_v49 }
  0xb3   : > { %v823_v26 = vpop.eup %822  ;;  %v447_v62 = vmul.f32 0.125, %v436_v53 }
  0xb4   : > { %v825_v28 = vpop.eup %824  ;;  %v375_v29 = vadd.f32 1.0, %v823_v26  ;;  %v378_v34 = vmul.f32 -0.5, %v823_v26  ;;  %v381_v42 = vand.u32 2147483647, %v823_v26 }
  0xb5   : > { %v384_v32 = vadd.f32 1.0, %v825_v28  ;;  %v387_v36 = vmul.f32 -0.5, %v825_v28  ;;  %v390_v46 = vand.u32 2147483647, %v825_v28 }
  0xb6   : > { %826 = vlog2.f32 %v375_v29  ;;  %v379_v40 = vadd.f32 1.0, %v378_v34  ;;  %vm382_vm1 = vcmp.lt.f32.partialorder %v381_v42, 0.0004427343 }
  0xb7   : > { %828 = vlog2.f32 %v384_v32  ;;  %v388_v43 = vadd.f32 1.0, %v387_v36  ;;  %vm391_vm2 = vcmp.lt.f32.partialorder %v390_v46, 0.0004427343 }
  0xb8   : > { %v380_v48 = vmul.f32 %v823_v26, %v379_v40 }
  0xb9   : > { %v389_v52 = vmul.f32 %v825_v28, %v388_v43 }
  0xc0   : > { %v827_v50 = vpop.eup %826 }
  0xc1   : > { %v829_v54 = vpop.eup %828  ;;  %v377_v56 = vmul.f32 0.6931472, %v827_v50 }
  0xc2   : > { %v386_v57 = vmul.f32 0.6931472, %v829_v54 }
  0xc3   : > { %v383_v58 = vsel %vm382_vm1, %v380_v48, %v377_v56 }
  0xc4   : > { %v392_v60 = vsel %vm391_vm2, %v389_v52, %v386_v57  ;;  %v393_v61 = vadd.f32 %v383_v58, %v361_v51 }
  0xc5   : > { %v394_v63 = vadd.f32 %v392_v60, %v362_v55 }
  0xc6   : > { %v395_v0 = vsel %vm363_vm3, %v1339_v2, %v393_v61 }
  0xc7   : > { %v396_v4 = vsel %vm364_vm4, %v1341_v3, %v394_v63  ;;  %v450_v5 = vmul.f32 %v446_v59, %v395_v0 }
  0xc8   : > { %v451_v7 = vmul.f32 %v447_v62, %v396_v4 }
  0xc9   : > { %v454_v8 = vadd.f32 %v452_v1, %v450_v5 }
  0xca   : > { %v455_v9 = vadd.f32 %v453_v6, %v451_v7 }
  0xcc   : > { %v731_v10 = vpack.c.bf16 %v455_v9, %v454_v8 }
  0xce   : > { %732 = vmatpush3.bf16.msra.mxu0 %v731_v10 }
  0xd1   : > { %728 = vmatmul.mubr.msk.f32.vlgmr.msra.gmra.mrb[0].mxu0 %vm458_vm5, %v457_v11 }
 0x1a4   : > { %v528_v2 = vpop.f32.mrb[0].mxu0 }
 0x1a5   : > { %537 = vst [vmem:[%s348_s5] sm:$0xff] %v528_v2  ;;  %v729_v3 = vpop.f32.mrb[1].mxu0 }
 0x1a6   : > { %961 = shalt.err (!%p958_p9)
}
 0x1a7   : > { %s962_s24 = scalar_lea.hbm %s1378_s26, 128  ;;  %s966_s10 = scalar_lea.hbm %s1429_s4, 256 }
 0x1a8   : > { %p963_p12 = scmp.ne.s32.totalorder %s1378_s26, %s962_s24  ;;  %p967_p13 = scmp.lt.u32.totalorder %s1378_s26, %s1429_s4 }
 0x1a9   : > { %p968_p10 = scmp.lt.u32.totalorder %s966_s10, %s962_s24  ;;  %p970_p0 = scmp.lt.u32.totalorder %s962_s24, %s1378_s26 }
 0x1aa   : > { %p964_p4 = pnand %p963_p12, %p1483_p11 }
 0x1ab   : > { %p969_p1 = por %p968_p10, %p967_p13 }
 0x1ac   : > { %p965_p7 = pneg %p964_p4 }
 0x1ad   : > { %p971_p2 = por %p970_p0, %p969_p1 }
 0x1af   : > { %p972_p5 = pnand %p971_p2, %p965_p7 }
 0x1b1   : > { %975 = shalt.err (!%p972_p5)
}
 0x1b2   : > { %743 = dma.vmem_to_hbm [thread:$0]  (%p1483_p11), %s1373_s12, 128, %s1378_s26, %s539_s8  }
 0x1b3 PF: > { %s1484_s11 = sld [smem:[#allocation18_spill]]  ;;  %s1485_s25 = sld [smem:[#allocation24_spill]] }
 0x1b4   : > { %s1486_s2 = sld [smem:[#allocation21_spill]] }
 0x1b9   : > { %s564_s15 = sand.u32 1, %s1484_s11   ;;  %p1487_p3 = scmp.ne.s32.totalorder %s1485_s25, 0 }
 0x1ba   : > { %p1488_p8 = scmp.ge.s32.totalorder %s1486_s2, 2  ;;  %s565_s27 = scalar_lea.sflag [#allocation7], %s564_s15 }
 0x1bc   : > { %p760_p6 = pnand %p1488_p8, %p1487_p3 }
 0x1be   : > { %1013 = dma.done.wait (!%p760_p6), %s565_s27, 128  }
 0x1bf   : > { %1015 = vsyncadd (!%p760_p6), %s565_s27, 4294967168  ;;  %s24_s20 = sadd.s32 1, %s1486_s2   ;;  %s1489_s29 = sld [smem:[#allocation19_spill]] }
 0x1c0   : > { %p21_p9 = scmp.ge.s32.totalorder %s24_s20, 4   ;;  %s1490_s17 = sld [smem:[#allocation23_spill]] }
 0x1c1   : > { %s1491_s18 = sld [smem:[#allocation20_spill]]  ;;  %s1492_s19 = sld [smem:[#allocation22_spill]] }
 0x1c2   : > { %s1493_s15 = smov %s1022_s16  ;;  %23 = sbr.rel (!%p21_p9) target bundleno = 12 (0xc), region = 127 }
 0x1c5   : > { %s1494_s16 = smov %s1489_s29 }
 0x1c9   :  { %570 = vsyncpa [#allocation6], 1 }
 0x1ca   :  { %572 = vsyncpa [#allocation6 + $0x1], 1 }
 0x1cb   :  { %573 = vsyncpa [#allocation9], 1 }
 0x1cc   :  { %575 = vsyncpa [#allocation9 + $0x1], 1 }
 0x1cd   :  { %576 = vsyncpa [#allocation12], 1 }
 0x1ce   :  { %578 = vsyncpa [#allocation12 + $0x1], 1 }
 0x1cf   :  { %579 = vsyncpa [#allocation7], 1 }
 0x1d0   :  { %581 = vsyncpa [#allocation7 + $0x1], 1 }

</bundles_post_ra>
